<compile_context>
chip_gen: v5e
topology: v5e:2x2
jax: 0.10.0
libtpu: 0.0.40
codegen_flags: <defaults>
</compile_context>

<pallas_src>
import functools

import jax
import jax.numpy as jnp
from jax import lax
from jax.experimental import pallas as pl
from jax.experimental.pallas import tpu as pltpu


_LANE_BLOCK = 4096                       # feature-axis tile (multiple of 128)
_NT_DIMS = (((1,), (1,)), ((), ()))      # contract last dims: x @ y.T, no transpose op


def _self_gram_f32(x):
    """x: (N, F) -> (N, N) float32 Gram matrix x @ x.T computed on the MXU.

    float32 operands are decomposed into bf16 hi/lo parts (x = hi + lo) and the
    Gram is assembled from four bf16 MXU matmuls with f32 accumulation, giving
    ~float32 accuracy without relying on the backend's default f32 matmul
    precision.  bf16 inputs go straight to the MXU.
    """
    if x.dtype == jnp.float32:
        hi = x.astype(jnp.bfloat16)
        lo = (x - hi.astype(jnp.float32)).astype(jnp.bfloat16)
        g = lax.dot_general(hi, hi, _NT_DIMS, preferred_element_type=jnp.float32)
        g = g + lax.dot_general(hi, lo, _NT_DIMS, preferred_element_type=jnp.float32)
        g = g + lax.dot_general(lo, hi, _NT_DIMS, preferred_element_type=jnp.float32)
        g = g + lax.dot_general(lo, lo, _NT_DIMS, preferred_element_type=jnp.float32)
        return g
    return lax.dot_general(x, x, _NT_DIMS, preferred_element_type=jnp.float32)


def _gram_diags(g):
    """Diagonal of an (N, N) Gram as a (N,1) column and a (1,N) row."""
    n = g.shape[0]
    rows = lax.broadcasted_iota(jnp.int32, (n, n), 0)
    cols = lax.broadcasted_iota(jnp.int32, (n, n), 1)
    eye = (rows == cols).astype(g.dtype)
    diag_col = jnp.sum(g * eye, axis=1, keepdims=True)   # ||x_i||^2, sublane-major
    diag_row = jnp.sum(g * eye, axis=0, keepdims=True)   # ||x_j||^2, lane-major
    return diag_col, diag_row


def _make_gram_kernel(metric, n, d_true, z_true):
    """'l2' / 'cosine' metrics: MXU Gram accumulation over feature chunks."""
    inv_d = 1.0 / d_true
    inv_z = 1.0 / z_true
    inv_n2 = 1.0 / (n * n)

    def kernel(noises_ref, layer_ref, out_ref, gram_ref):
        k = pl.program_id(0)
        nsteps = pl.num_programs(0)

        @pl.when(k == 0)
        def _init():
            gram_ref[...] = jnp.zeros_like(gram_ref)

        # Accumulate the layer Gram for this feature chunk on the MXU.
        gram_ref[...] += _self_gram_f32(layer_ref[...])

        @pl.when(k == nsteps - 1)
        def _finalize():
            g = gram_ref[...]                                     # (N, N) f32
            gd_col, gd_row = _gram_diags(g)

            # noise_dist: computed exactly once (hoisted out of any loop),
            # also via a Gram ('l2' metric), clamped at 0 vs. rounding.
            gn = _self_gram_f32(noises_ref[...])
            nd_col, nd_row = _gram_diags(gn)
            noise_dist = (jnp.maximum(nd_col + nd_row - 2.0 * gn, 0.0)
                          * jnp.float32(inv_z))

            if metric == "l2":
                layer_dist = (jnp.maximum(gd_col + gd_row - 2.0 * g, 0.0)
                              * jnp.float32(inv_d))
            else:  # cosine
                # 1 - dot / max(||a||*||b||, 1e-8); rsqrt rides the EUP slot.
                # (max(sqrt(p), 1e-8) == sqrt(max(p, 1e-16)))
                # TODO(synk): PyTorch F.cosine_similarity clamps each norm to
                # eps individually; this matches the product-clamp reference.
                denom_sq = jnp.maximum(gd_col * gd_row, jnp.float32(1e-16))
                layer_dist = 1.0 - g * lax.rsqrt(denom_sq)

            total = jnp.sum(noise_dist * layer_dist)
            out_ref[0, 0] = jnp.exp(-total * jnp.float32(inv_n2))

    return kernel


def _make_l1_kernel(n, d_true, z_true):
    """'l1' metric: unrolled per-row loop, streamed over feature chunks."""
    inv_d = 1.0 / d_true
    inv_z = 1.0 / z_true
    inv_n2 = 1.0 / (n * n)
    unroll = n if n <= 8 else 8

    def kernel(noises_ref, layer_ref, out_ref, acc_ref):
        k = pl.program_id(0)
        nsteps = pl.num_programs(0)

        @pl.when(k == 0)
        def _init():
            acc_ref[0, 0] = jnp.float32(0.0)

        def body(i, partial):
            # Layer L1 distances of every row against row i for this chunk.
            # Tiles are re-read from VMEM refs each iteration to keep vreg
            # pressure bounded instead of pinning the whole block in vregs.
            lb = layer_ref[...].astype(jnp.float32)                  # (N, Dc)
            li = layer_ref[pl.ds(i, 1), :].astype(jnp.float32)       # (1, Dc)
            l1_col = (jnp.sum(jnp.abs(lb - li), axis=-1, keepdims=True)
                      * jnp.float32(inv_d))                          # (N, 1)

            # Noise l2 distances against row i.  Kept per-row (exact f32 VPU
            # math; O(N*Z) per iteration, negligible next to the O(N*Dc) layer
            # term) — a full hoist would need a dynamic lane slice or a
            # per-row transpose to pair with the sublane-major l1 column.
            nb = noises_ref[...].astype(jnp.float32)                 # (N, Z)
            ni = noises_ref[pl.ds(i, 1), :].astype(jnp.float32)      # (1, Z)
            ndiff = nb - ni
            nd_col = (jnp.sum(ndiff * ndiff, axis=-1, keepdims=True)
                      * jnp.float32(inv_z))                          # (N, 1)

            return partial + jnp.sum(nd_col * l1_col)

        partial = lax.fori_loop(0, n, body, jnp.float32(0.0), unroll=unroll)
        acc_ref[0, 0] = acc_ref[0, 0] + partial

        @pl.when(k == nsteps - 1)
        def _finalize():
            out_ref[0, 0] = jnp.exp(-acc_ref[0, 0] * jnp.float32(inv_n2))

    return kernel


def _normalize_dtype(x):
    # Keep f32/bf16 as-is (bf16 halves HBM->VMEM traffic; MXU widens to f32
    # via preferred_element_type).  Anything else is normalized to f32.
    if x.dtype == jnp.float32 or x.dtype == jnp.bfloat16:
        return x
    return x.astype(jnp.float32)


@functools.partial(jax.jit, static_argnames=("metric",))
def diversity_loss(noises, layer, metric="l2"):
    """JAX/Pallas equivalent of DiversityLoss(metric)(noises, layer)."""
    if metric not in ("l1", "l2", "cosine"):
        raise ValueError(metric)

    if layer.ndim > 2:
        layer = layer.reshape(layer.shape[0], -1)

    noises = _normalize_dtype(noises)
    layer = _normalize_dtype(layer)

    n, d = layer.shape
    z = noises.shape[1]
    if noises.shape[0] != n:
        raise ValueError("noises and layer must share the batch dimension")

    # Tile the feature axis so a double-buffered block stays small vs. VMEM on
    # every generation (v7x: 64 MiB per TensorCore).  Zero padding is neutral
    # for the Gram matrices and for L1 sums; distances divide by the true d.
    if d <= _LANE_BLOCK:
        dc, nsteps = d, 1
    else:
        dc = _LANE_BLOCK
        nsteps = pl.cdiv(d, dc)
        pad = nsteps * dc - d
        if pad:
            layer = jnp.pad(layer, ((0, 0), (0, pad)))

    if metric == "l1":
        kernel = _make_l1_kernel(n, d, z)
        scratch = [pltpu.SMEM((1, 1), jnp.float32)]
        flops = 3 * n * n * (d + z * nsteps)
    else:
        kernel = _make_gram_kernel(metric, n, d, z)
        scratch = [pltpu.VMEM((n, n), jnp.float32)]
        passes = 4 if layer.dtype == jnp.float32 else 1
        flops = 2 * n * n * (d + z) * passes + 12 * n * n

    itemsize = layer.dtype.itemsize
    cost = pl.CostEstimate(
        flops=int(flops),
        transcendentals=int(1 + (n * n if metric == "cosine" else 0)),
        bytes_accessed=int(n * d * itemsize
                           + n * z * noises.dtype.itemsize + 4),
    )

    block_bytes = n * dc * itemsize
    vmem_limit = int(min(max(4 * block_bytes + (8 << 20), 32 << 20), 64 << 20))

    grid_spec = pltpu.PrefetchScalarGridSpec(
        num_scalar_prefetch=0,
        grid=(nsteps,),
        in_specs=[
            pl.BlockSpec((n, z), lambda k: (0, 0)),    # noises: resident block
            pl.BlockSpec((n, dc), lambda k: (0, k)),   # layer: streamed over D
        ],
        out_specs=pl.BlockSpec((1, 1), lambda k: (0, 0),
                               memory_space=pltpu.MemorySpace.SMEM),
        scratch_shapes=scratch,
    )

    out = pl.pallas_call(
        kernel,
        out_shape=jax.ShapeDtypeStruct((1, 1), jnp.float32),
        grid_spec=grid_spec,
        compiler_params=pltpu.CompilerParams(
            dimension_semantics=("arbitrary",),   # feature axis is a reduction
            vmem_limit_bytes=vmem_limit,
        ),
        cost_estimate=cost,
    )(noises, layer)
    return out[0, 0]


def _reference(noises, layer, metric):
    """Pure-JAX reference mirroring the PyTorch module, for a sanity check."""
    if layer.ndim > 2:
        layer = layer.reshape(layer.shape[0], -1)

    def pairwise(x, how):
        t1 = x[None, :, :]        # tensor.expand((n, n, d)) -> [i, j] = x[j]
        t2 = x[:, None, :]        # tensor.unsqueeze(1)      -> [i, 0] = x[i]
        if how == "l1":
            return jnp.mean(jnp.abs(t1 - t2), axis=2)
        if how == "l2":
            return jnp.mean((t1 - t2) ** 2, axis=2)
        if how == "cosine":
            dots = jnp.sum(t1 * t2, axis=2)
            n1 = jnp.linalg.norm(x, axis=1)[None, :]
            n2 = jnp.linalg.norm(x, axis=1)[:, None]
            return 1.0 - dots / jnp.maximum(n1 * n2, 1e-8)
        raise ValueError(how)

    layer_dist = pairwise(layer, metric)
    noise_dist = pairwise(noises, "l2")
    return jnp.exp(jnp.mean(-noise_dist * layer_dist))


if __name__ == "__main__":
    key = jax.random.PRNGKey(0)
    k_na, k_la, k_nb, k_lb = jax.random.split(key, 4)

    # (a) small conv-style activations -> single feature block (grid of 1)
    noises_a = jax.random.normal(k_na, (8, 16), dtype=jnp.float32)
    layer_a = jax.random.normal(k_la, (8, 4, 4, 4), dtype=jnp.float32)

    # (b) wider activations -> exercises the D-tiled grid path (+ zero padding)
    noises_b = jax.random.normal(k_nb, (8, 32), dtype=jnp.float32)
    layer_b = jax.random.normal(k_lb, (8, 8, 30, 30), dtype=jnp.float32)

    ok = True
    for name, noises, layer in (("a", noises_a, layer_a), ("b", noises_b, layer_b)):
        for metric in ("l1", "l2", "cosine"):
            got = jax.block_until_ready(diversity_loss(noises, layer, metric=metric))
            want = jax.block_until_ready(_reference(noises, layer, metric))
            # l1 path is (near-)exact f32; l2/cosine use the MXU Gram
            # formulation whose numerics differ from the elementwise reference
            # at the ~1e-5..1e-4 relative level.
            tol = 1e-4 if metric == "l1" else 1e-3
            if not jnp.allclose(got, want, rtol=tol, atol=1e-6):
                ok = False
                print(f"mismatch[{name}/{metric}]: {float(got)} vs {float(want)}")

    if ok:
        print("KERNEL_OK")
</pallas_src>

<mosaic_0001>
module attributes {stable_mosaic.version = 11 : i64} {
  func.func @kernel(%arg0: i32, %arg1: memref<8x16xf32, #tpu.memory_space<vmem>>, %arg2: memref<8x64xf32, #tpu.memory_space<vmem>>, %arg3: memref<1x1xf32, #tpu.memory_space<smem>>, %arg4: memref<1x1xf32, #tpu.memory_space<smem>>) attributes {dimension_semantics = [#tpu.dimension_semantics<arbitrary>], iteration_bounds = array<i64: 1>, scalar_prefetch = 0 : i64, scratch_operands = 1 : i64, tpu.core_type = #tpu.core_type<tc>, window_params = [{pipeline_mode = #tpu.pipeline_mode<synchronous>, transform_indices = @transform_0, window_bounds = array<i64: 8, 16>}, {transform_indices = @transform_1, window_bounds = array<i64: 8, 64>}, {transform_indices = @transform_2, window_bounds = array<i64: 1, 1>}]} {
    %c0_i32 = arith.constant 0 : i32
    %0 = arith.cmpi eq, %arg0, %c0_i32 : i32
    %1 = arith.extui %0 : i1 to i32
    %c0_i32_0 = arith.constant 0 : i32
    %2 = arith.cmpi ne, %1, %c0_i32_0 : i32
    scf.if %2 {
      %cst_95 = arith.constant 0.000000e+00 : f32
      %c0_96 = arith.constant 0 : index
      %c0_97 = arith.constant 0 : index
      %217 = memref.load %arg4[%c0_96, %c0_97] : memref<1x1xf32, #tpu.memory_space<smem>>
      memref.store %cst_95, %arg4[%c0_96, %c0_97] : memref<1x1xf32, #tpu.memory_space<smem>>
    } else {
    }
    %cst = arith.constant 0.000000e+00 : f32
    %c0_i32_1 = arith.constant 0 : i32
    %c0 = arith.constant 0 : index
    %c0_2 = arith.constant 0 : index
    %3 = vector.load %arg2[%c0, %c0_2] : memref<8x64xf32, #tpu.memory_space<vmem>>, vector<8x64xf32>
    %4 = arith.index_cast %c0_i32_1 : i32 to index
    %c0_3 = arith.constant 0 : index
    %5 = vector.load %arg2[%4, %c0_3] : memref<8x64xf32, #tpu.memory_space<vmem>>, vector<1x64xf32>
    %6 = vector.broadcast %5 : vector<1x64xf32> to vector<8x64xf32>
    %7 = arith.subf %3, %6 : vector<8x64xf32>
    %8 = math.absf %7 : vector<8x64xf32>
    %cst_4 = arith.constant dense<0.000000e+00> : vector<8xf32>
    %9 = vector.multi_reduction <add>, %8, %cst_4 [1] : vector<8x64xf32> to vector<8xf32>
    %10 = vector.shape_cast %9 : vector<8xf32> to vector<8x1xf32>
    %cst_5 = arith.constant 1.562500e-02 : f32
    %11 = vector.broadcast %cst_5 : f32 to vector<8x1xf32>
    %12 = arith.mulf %10, %11 : vector<8x1xf32>
    %c0_6 = arith.constant 0 : index
    %c0_7 = arith.constant 0 : index
    %13 = vector.load %arg1[%c0_6, %c0_7] : memref<8x16xf32, #tpu.memory_space<vmem>>, vector<8x16xf32>
    %14 = arith.index_cast %c0_i32_1 : i32 to index
    %c0_8 = arith.constant 0 : index
    %15 = vector.load %arg1[%14, %c0_8] : memref<8x16xf32, #tpu.memory_space<vmem>>, vector<1x16xf32>
    %16 = vector.broadcast %15 : vector<1x16xf32> to vector<8x16xf32>
    %17 = arith.subf %13, %16 : vector<8x16xf32>
    %18 = arith.mulf %17, %17 : vector<8x16xf32>
    %cst_9 = arith.constant dense<0.000000e+00> : vector<8xf32>
    %19 = vector.multi_reduction <add>, %18, %cst_9 [1] : vector<8x16xf32> to vector<8xf32>
    %20 = vector.shape_cast %19 : vector<8xf32> to vector<8x1xf32>
    %cst_10 = arith.constant 6.250000e-02 : f32
    %21 = vector.broadcast %cst_10 : f32 to vector<8x1xf32>
    %22 = arith.mulf %20, %21 : vector<8x1xf32>
    %23 = arith.mulf %22, %12 : vector<8x1xf32>
    %24 = vector.shape_cast %23 : vector<8x1xf32> to vector<1x8x1xf32>
    %cst_11 = arith.constant dense<0.000000e+00> : vector<1xf32>
    %25 = vector.multi_reduction <add>, %24, %cst_11 [1, 2] : vector<1x8x1xf32> to vector<1xf32>
    %26 = vector.shape_cast %25 : vector<1xf32> to vector<1x1x1xf32>
    %27 = vector.extract %26[0, 0, 0] : f32 from vector<1x1x1xf32>
    %28 = arith.addf %cst, %27 : f32
    %c1_i32 = arith.constant 1 : i32
    %c0_12 = arith.constant 0 : index
    %c0_13 = arith.constant 0 : index
    %29 = vector.load %arg2[%c0_12, %c0_13] : memref<8x64xf32, #tpu.memory_space<vmem>>, vector<8x64xf32>
    %30 = arith.index_cast %c1_i32 : i32 to index
    %c0_14 = arith.constant 0 : index
    %31 = vector.load %arg2[%30, %c0_14] : memref<8x64xf32, #tpu.memory_space<vmem>>, vector<1x64xf32>
    %32 = vector.broadcast %31 : vector<1x64xf32> to vector<8x64xf32>
    %33 = arith.subf %29, %32 : vector<8x64xf32>
    %34 = math.absf %33 : vector<8x64xf32>
    %cst_15 = arith.constant dense<0.000000e+00> : vector<8xf32>
    %35 = vector.multi_reduction <add>, %34, %cst_15 [1] : vector<8x64xf32> to vector<8xf32>
    %36 = vector.shape_cast %35 : vector<8xf32> to vector<8x1xf32>
    %cst_16 = arith.constant 1.562500e-02 : f32
    %37 = vector.broadcast %cst_16 : f32 to vector<8x1xf32>
    %38 = arith.mulf %36, %37 : vector<8x1xf32>
    %c0_17 = arith.constant 0 : index
    %c0_18 = arith.constant 0 : index
    %39 = vector.load %arg1[%c0_17, %c0_18] : memref<8x16xf32, #tpu.memory_space<vmem>>, vector<8x16xf32>
    %40 = arith.index_cast %c1_i32 : i32 to index
    %c0_19 = arith.constant 0 : index
    %41 = vector.load %arg1[%40, %c0_19] : memref<8x16xf32, #tpu.memory_space<vmem>>, vector<1x16xf32>
    %42 = vector.broadcast %41 : vector<1x16xf32> to vector<8x16xf32>
    %43 = arith.subf %39, %42 : vector<8x16xf32>
    %44 = arith.mulf %43, %43 : vector<8x16xf32>
    %cst_20 = arith.constant dense<0.000000e+00> : vector<8xf32>
    %45 = vector.multi_reduction <add>, %44, %cst_20 [1] : vector<8x16xf32> to vector<8xf32>
    %46 = vector.shape_cast %45 : vector<8xf32> to vector<8x1xf32>
    %cst_21 = arith.constant 6.250000e-02 : f32
    %47 = vector.broadcast %cst_21 : f32 to vector<8x1xf32>
    %48 = arith.mulf %46, %47 : vector<8x1xf32>
    %49 = arith.mulf %48, %38 : vector<8x1xf32>
    %50 = vector.shape_cast %49 : vector<8x1xf32> to vector<1x8x1xf32>
    %cst_22 = arith.constant dense<0.000000e+00> : vector<1xf32>
    %51 = vector.multi_reduction <add>, %50, %cst_22 [1, 2] : vector<1x8x1xf32> to vector<1xf32>
    %52 = vector.shape_cast %51 : vector<1xf32> to vector<1x1x1xf32>
    %53 = vector.extract %52[0, 0, 0] : f32 from vector<1x1x1xf32>
    %54 = arith.addf %28, %53 : f32
    %c2_i32 = arith.constant 2 : i32
    %c0_23 = arith.constant 0 : index
    %c0_24 = arith.constant 0 : index
    %55 = vector.load %arg2[%c0_23, %c0_24] : memref<8x64xf32, #tpu.memory_space<vmem>>, vector<8x64xf32>
    %56 = arith.index_cast %c2_i32 : i32 to index
    %c0_25 = arith.constant 0 : index
    %57 = vector.load %arg2[%56, %c0_25] : memref<8x64xf32, #tpu.memory_space<vmem>>, vector<1x64xf32>
    %58 = vector.broadcast %57 : vector<1x64xf32> to vector<8x64xf32>
    %59 = arith.subf %55, %58 : vector<8x64xf32>
    %60 = math.absf %59 : vector<8x64xf32>
    %cst_26 = arith.constant dense<0.000000e+00> : vector<8xf32>
    %61 = vector.multi_reduction <add>, %60, %cst_26 [1] : vector<8x64xf32> to vector<8xf32>
    %62 = vector.shape_cast %61 : vector<8xf32> to vector<8x1xf32>
    %cst_27 = arith.constant 1.562500e-02 : f32
    %63 = vector.broadcast %cst_27 : f32 to vector<8x1xf32>
    %64 = arith.mulf %62, %63 : vector<8x1xf32>
    %c0_28 = arith.constant 0 : index
    %c0_29 = arith.constant 0 : index
    %65 = vector.load %arg1[%c0_28, %c0_29] : memref<8x16xf32, #tpu.memory_space<vmem>>, vector<8x16xf32>
    %66 = arith.index_cast %c2_i32 : i32 to index
    %c0_30 = arith.constant 0 : index
    %67 = vector.load %arg1[%66, %c0_30] : memref<8x16xf32, #tpu.memory_space<vmem>>, vector<1x16xf32>
    %68 = vector.broadcast %67 : vector<1x16xf32> to vector<8x16xf32>
    %69 = arith.subf %65, %68 : vector<8x16xf32>
    %70 = arith.mulf %69, %69 : vector<8x16xf32>
    %cst_31 = arith.constant dense<0.000000e+00> : vector<8xf32>
    %71 = vector.multi_reduction <add>, %70, %cst_31 [1] : vector<8x16xf32> to vector<8xf32>
    %72 = vector.shape_cast %71 : vector<8xf32> to vector<8x1xf32>
    %cst_32 = arith.constant 6.250000e-02 : f32
    %73 = vector.broadcast %cst_32 : f32 to vector<8x1xf32>
    %74 = arith.mulf %72, %73 : vector<8x1xf32>
    %75 = arith.mulf %74, %64 : vector<8x1xf32>
    %76 = vector.shape_cast %75 : vector<8x1xf32> to vector<1x8x1xf32>
    %cst_33 = arith.constant dense<0.000000e+00> : vector<1xf32>
    %77 = vector.multi_reduction <add>, %76, %cst_33 [1, 2] : vector<1x8x1xf32> to vector<1xf32>
    %78 = vector.shape_cast %77 : vector<1xf32> to vector<1x1x1xf32>
    %79 = vector.extract %78[0, 0, 0] : f32 from vector<1x1x1xf32>
    %80 = arith.addf %54, %79 : f32
    %c3_i32 = arith.constant 3 : i32
    %c0_34 = arith.constant 0 : index
    %c0_35 = arith.constant 0 : index
    %81 = vector.load %arg2[%c0_34, %c0_35] : memref<8x64xf32, #tpu.memory_space<vmem>>, vector<8x64xf32>
    %82 = arith.index_cast %c3_i32 : i32 to index
    %c0_36 = arith.constant 0 : index
    %83 = vector.load %arg2[%82, %c0_36] : memref<8x64xf32, #tpu.memory_space<vmem>>, vector<1x64xf32>
    %84 = vector.broadcast %83 : vector<1x64xf32> to vector<8x64xf32>
    %85 = arith.subf %81, %84 : vector<8x64xf32>
    %86 = math.absf %85 : vector<8x64xf32>
    %cst_37 = arith.constant dense<0.000000e+00> : vector<8xf32>
    %87 = vector.multi_reduction <add>, %86, %cst_37 [1] : vector<8x64xf32> to vector<8xf32>
    %88 = vector.shape_cast %87 : vector<8xf32> to vector<8x1xf32>
    %cst_38 = arith.constant 1.562500e-02 : f32
    %89 = vector.broadcast %cst_38 : f32 to vector<8x1xf32>
    %90 = arith.mulf %88, %89 : vector<8x1xf32>
    %c0_39 = arith.constant 0 : index
    %c0_40 = arith.constant 0 : index
    %91 = vector.load %arg1[%c0_39, %c0_40] : memref<8x16xf32, #tpu.memory_space<vmem>>, vector<8x16xf32>
    %92 = arith.index_cast %c3_i32 : i32 to index
    %c0_41 = arith.constant 0 : index
    %93 = vector.load %arg1[%92, %c0_41] : memref<8x16xf32, #tpu.memory_space<vmem>>, vector<1x16xf32>
    %94 = vector.broadcast %93 : vector<1x16xf32> to vector<8x16xf32>
    %95 = arith.subf %91, %94 : vector<8x16xf32>
    %96 = arith.mulf %95, %95 : vector<8x16xf32>
    %cst_42 = arith.constant dense<0.000000e+00> : vector<8xf32>
    %97 = vector.multi_reduction <add>, %96, %cst_42 [1] : vector<8x16xf32> to vector<8xf32>
    %98 = vector.shape_cast %97 : vector<8xf32> to vector<8x1xf32>
    %cst_43 = arith.constant 6.250000e-02 : f32
    %99 = vector.broadcast %cst_43 : f32 to vector<8x1xf32>
    %100 = arith.mulf %98, %99 : vector<8x1xf32>
    %101 = arith.mulf %100, %90 : vector<8x1xf32>
    %102 = vector.shape_cast %101 : vector<8x1xf32> to vector<1x8x1xf32>
    %cst_44 = arith.constant dense<0.000000e+00> : vector<1xf32>
    %103 = vector.multi_reduction <add>, %102, %cst_44 [1, 2] : vector<1x8x1xf32> to vector<1xf32>
    %104 = vector.shape_cast %103 : vector<1xf32> to vector<1x1x1xf32>
    %105 = vector.extract %104[0, 0, 0] : f32 from vector<1x1x1xf32>
    %106 = arith.addf %80, %105 : f32
    %c4_i32 = arith.constant 4 : i32
    %c0_45 = arith.constant 0 : index
    %c0_46 = arith.constant 0 : index
    %107 = vector.load %arg2[%c0_45, %c0_46] : memref<8x64xf32, #tpu.memory_space<vmem>>, vector<8x64xf32>
    %108 = arith.index_cast %c4_i32 : i32 to index
    %c0_47 = arith.constant 0 : index
    %109 = vector.load %arg2[%108, %c0_47] : memref<8x64xf32, #tpu.memory_space<vmem>>, vector<1x64xf32>
    %110 = vector.broadcast %109 : vector<1x64xf32> to vector<8x64xf32>
    %111 = arith.subf %107, %110 : vector<8x64xf32>
    %112 = math.absf %111 : vector<8x64xf32>
    %cst_48 = arith.constant dense<0.000000e+00> : vector<8xf32>
    %113 = vector.multi_reduction <add>, %112, %cst_48 [1] : vector<8x64xf32> to vector<8xf32>
    %114 = vector.shape_cast %113 : vector<8xf32> to vector<8x1xf32>
    %cst_49 = arith.constant 1.562500e-02 : f32
    %115 = vector.broadcast %cst_49 : f32 to vector<8x1xf32>
    %116 = arith.mulf %114, %115 : vector<8x1xf32>
    %c0_50 = arith.constant 0 : index
    %c0_51 = arith.constant 0 : index
    %117 = vector.load %arg1[%c0_50, %c0_51] : memref<8x16xf32, #tpu.memory_space<vmem>>, vector<8x16xf32>
    %118 = arith.index_cast %c4_i32 : i32 to index
    %c0_52 = arith.constant 0 : index
    %119 = vector.load %arg1[%118, %c0_52] : memref<8x16xf32, #tpu.memory_space<vmem>>, vector<1x16xf32>
    %120 = vector.broadcast %119 : vector<1x16xf32> to vector<8x16xf32>
    %121 = arith.subf %117, %120 : vector<8x16xf32>
    %122 = arith.mulf %121, %121 : vector<8x16xf32>
    %cst_53 = arith.constant dense<0.000000e+00> : vector<8xf32>
    %123 = vector.multi_reduction <add>, %122, %cst_53 [1] : vector<8x16xf32> to vector<8xf32>
    %124 = vector.shape_cast %123 : vector<8xf32> to vector<8x1xf32>
    %cst_54 = arith.constant 6.250000e-02 : f32
    %125 = vector.broadcast %cst_54 : f32 to vector<8x1xf32>
    %126 = arith.mulf %124, %125 : vector<8x1xf32>
    %127 = arith.mulf %126, %116 : vector<8x1xf32>
    %128 = vector.shape_cast %127 : vector<8x1xf32> to vector<1x8x1xf32>
    %cst_55 = arith.constant dense<0.000000e+00> : vector<1xf32>
    %129 = vector.multi_reduction <add>, %128, %cst_55 [1, 2] : vector<1x8x1xf32> to vector<1xf32>
    %130 = vector.shape_cast %129 : vector<1xf32> to vector<1x1x1xf32>
    %131 = vector.extract %130[0, 0, 0] : f32 from vector<1x1x1xf32>
    %132 = arith.addf %106, %131 : f32
    %c5_i32 = arith.constant 5 : i32
    %c0_56 = arith.constant 0 : index
    %c0_57 = arith.constant 0 : index
    %133 = vector.load %arg2[%c0_56, %c0_57] : memref<8x64xf32, #tpu.memory_space<vmem>>, vector<8x64xf32>
    %134 = arith.index_cast %c5_i32 : i32 to index
    %c0_58 = arith.constant 0 : index
    %135 = vector.load %arg2[%134, %c0_58] : memref<8x64xf32, #tpu.memory_space<vmem>>, vector<1x64xf32>
    %136 = vector.broadcast %135 : vector<1x64xf32> to vector<8x64xf32>
    %137 = arith.subf %133, %136 : vector<8x64xf32>
    %138 = math.absf %137 : vector<8x64xf32>
    %cst_59 = arith.constant dense<0.000000e+00> : vector<8xf32>
    %139 = vector.multi_reduction <add>, %138, %cst_59 [1] : vector<8x64xf32> to vector<8xf32>
    %140 = vector.shape_cast %139 : vector<8xf32> to vector<8x1xf32>
    %cst_60 = arith.constant 1.562500e-02 : f32
    %141 = vector.broadcast %cst_60 : f32 to vector<8x1xf32>
    %142 = arith.mulf %140, %141 : vector<8x1xf32>
    %c0_61 = arith.constant 0 : index
    %c0_62 = arith.constant 0 : index
    %143 = vector.load %arg1[%c0_61, %c0_62] : memref<8x16xf32, #tpu.memory_space<vmem>>, vector<8x16xf32>
    %144 = arith.index_cast %c5_i32 : i32 to index
    %c0_63 = arith.constant 0 : index
    %145 = vector.load %arg1[%144, %c0_63] : memref<8x16xf32, #tpu.memory_space<vmem>>, vector<1x16xf32>
    %146 = vector.broadcast %145 : vector<1x16xf32> to vector<8x16xf32>
    %147 = arith.subf %143, %146 : vector<8x16xf32>
    %148 = arith.mulf %147, %147 : vector<8x16xf32>
    %cst_64 = arith.constant dense<0.000000e+00> : vector<8xf32>
    %149 = vector.multi_reduction <add>, %148, %cst_64 [1] : vector<8x16xf32> to vector<8xf32>
    %150 = vector.shape_cast %149 : vector<8xf32> to vector<8x1xf32>
    %cst_65 = arith.constant 6.250000e-02 : f32
    %151 = vector.broadcast %cst_65 : f32 to vector<8x1xf32>
    %152 = arith.mulf %150, %151 : vector<8x1xf32>
    %153 = arith.mulf %152, %142 : vector<8x1xf32>
    %154 = vector.shape_cast %153 : vector<8x1xf32> to vector<1x8x1xf32>
    %cst_66 = arith.constant dense<0.000000e+00> : vector<1xf32>
    %155 = vector.multi_reduction <add>, %154, %cst_66 [1, 2] : vector<1x8x1xf32> to vector<1xf32>
    %156 = vector.shape_cast %155 : vector<1xf32> to vector<1x1x1xf32>
    %157 = vector.extract %156[0, 0, 0] : f32 from vector<1x1x1xf32>
    %158 = arith.addf %132, %157 : f32
    %c6_i32 = arith.constant 6 : i32
    %c0_67 = arith.constant 0 : index
    %c0_68 = arith.constant 0 : index
    %159 = vector.load %arg2[%c0_67, %c0_68] : memref<8x64xf32, #tpu.memory_space<vmem>>, vector<8x64xf32>
    %160 = arith.index_cast %c6_i32 : i32 to index
    %c0_69 = arith.constant 0 : index
    %161 = vector.load %arg2[%160, %c0_69] : memref<8x64xf32, #tpu.memory_space<vmem>>, vector<1x64xf32>
    %162 = vector.broadcast %161 : vector<1x64xf32> to vector<8x64xf32>
    %163 = arith.subf %159, %162 : vector<8x64xf32>
    %164 = math.absf %163 : vector<8x64xf32>
    %cst_70 = arith.constant dense<0.000000e+00> : vector<8xf32>
    %165 = vector.multi_reduction <add>, %164, %cst_70 [1] : vector<8x64xf32> to vector<8xf32>
    %166 = vector.shape_cast %165 : vector<8xf32> to vector<8x1xf32>
    %cst_71 = arith.constant 1.562500e-02 : f32
    %167 = vector.broadcast %cst_71 : f32 to vector<8x1xf32>
    %168 = arith.mulf %166, %167 : vector<8x1xf32>
    %c0_72 = arith.constant 0 : index
    %c0_73 = arith.constant 0 : index
    %169 = vector.load %arg1[%c0_72, %c0_73] : memref<8x16xf32, #tpu.memory_space<vmem>>, vector<8x16xf32>
    %170 = arith.index_cast %c6_i32 : i32 to index
    %c0_74 = arith.constant 0 : index
    %171 = vector.load %arg1[%170, %c0_74] : memref<8x16xf32, #tpu.memory_space<vmem>>, vector<1x16xf32>
    %172 = vector.broadcast %171 : vector<1x16xf32> to vector<8x16xf32>
    %173 = arith.subf %169, %172 : vector<8x16xf32>
    %174 = arith.mulf %173, %173 : vector<8x16xf32>
    %cst_75 = arith.constant dense<0.000000e+00> : vector<8xf32>
    %175 = vector.multi_reduction <add>, %174, %cst_75 [1] : vector<8x16xf32> to vector<8xf32>
    %176 = vector.shape_cast %175 : vector<8xf32> to vector<8x1xf32>
    %cst_76 = arith.constant 6.250000e-02 : f32
    %177 = vector.broadcast %cst_76 : f32 to vector<8x1xf32>
    %178 = arith.mulf %176, %177 : vector<8x1xf32>
    %179 = arith.mulf %178, %168 : vector<8x1xf32>
    %180 = vector.shape_cast %179 : vector<8x1xf32> to vector<1x8x1xf32>
    %cst_77 = arith.constant dense<0.000000e+00> : vector<1xf32>
    %181 = vector.multi_reduction <add>, %180, %cst_77 [1, 2] : vector<1x8x1xf32> to vector<1xf32>
    %182 = vector.shape_cast %181 : vector<1xf32> to vector<1x1x1xf32>
    %183 = vector.extract %182[0, 0, 0] : f32 from vector<1x1x1xf32>
    %184 = arith.addf %158, %183 : f32
    %c7_i32 = arith.constant 7 : i32
    %c0_78 = arith.constant 0 : index
    %c0_79 = arith.constant 0 : index
    %185 = vector.load %arg2[%c0_78, %c0_79] : memref<8x64xf32, #tpu.memory_space<vmem>>, vector<8x64xf32>
    %186 = arith.index_cast %c7_i32 : i32 to index
    %c0_80 = arith.constant 0 : index
    %187 = vector.load %arg2[%186, %c0_80] : memref<8x64xf32, #tpu.memory_space<vmem>>, vector<1x64xf32>
    %188 = vector.broadcast %187 : vector<1x64xf32> to vector<8x64xf32>
    %189 = arith.subf %185, %188 : vector<8x64xf32>
    %190 = math.absf %189 : vector<8x64xf32>
    %cst_81 = arith.constant dense<0.000000e+00> : vector<8xf32>
    %191 = vector.multi_reduction <add>, %190, %cst_81 [1] : vector<8x64xf32> to vector<8xf32>
    %192 = vector.shape_cast %191 : vector<8xf32> to vector<8x1xf32>
    %cst_82 = arith.constant 1.562500e-02 : f32
    %193 = vector.broadcast %cst_82 : f32 to vector<8x1xf32>
    %194 = arith.mulf %192, %193 : vector<8x1xf32>
    %c0_83 = arith.constant 0 : index
    %c0_84 = arith.constant 0 : index
    %195 = vector.load %arg1[%c0_83, %c0_84] : memref<8x16xf32, #tpu.memory_space<vmem>>, vector<8x16xf32>
    %196 = arith.index_cast %c7_i32 : i32 to index
    %c0_85 = arith.constant 0 : index
    %197 = vector.load %arg1[%196, %c0_85] : memref<8x16xf32, #tpu.memory_space<vmem>>, vector<1x16xf32>
    %198 = vector.broadcast %197 : vector<1x16xf32> to vector<8x16xf32>
    %199 = arith.subf %195, %198 : vector<8x16xf32>
    %200 = arith.mulf %199, %199 : vector<8x16xf32>
    %cst_86 = arith.constant dense<0.000000e+00> : vector<8xf32>
    %201 = vector.multi_reduction <add>, %200, %cst_86 [1] : vector<8x16xf32> to vector<8xf32>
    %202 = vector.shape_cast %201 : vector<8xf32> to vector<8x1xf32>
    %cst_87 = arith.constant 6.250000e-02 : f32
    %203 = vector.broadcast %cst_87 : f32 to vector<8x1xf32>
    %204 = arith.mulf %202, %203 : vector<8x1xf32>
    %205 = arith.mulf %204, %194 : vector<8x1xf32>
    %206 = vector.shape_cast %205 : vector<8x1xf32> to vector<1x8x1xf32>
    %cst_88 = arith.constant dense<0.000000e+00> : vector<1xf32>
    %207 = vector.multi_reduction <add>, %206, %cst_88 [1, 2] : vector<1x8x1xf32> to vector<1xf32>
    %208 = vector.shape_cast %207 : vector<1xf32> to vector<1x1x1xf32>
    %209 = vector.extract %208[0, 0, 0] : f32 from vector<1x1x1xf32>
    %210 = arith.addf %184, %209 : f32
    %c8_i32 = arith.constant 8 : i32
    %c0_89 = arith.constant 0 : index
    %c0_90 = arith.constant 0 : index
    %211 = memref.load %arg4[%c0_89, %c0_90] : memref<1x1xf32, #tpu.memory_space<smem>>
    %212 = arith.addf %211, %210 : f32
    %c0_91 = arith.constant 0 : index
    %c0_92 = arith.constant 0 : index
    %213 = memref.load %arg4[%c0_91, %c0_92] : memref<1x1xf32, #tpu.memory_space<smem>>
    memref.store %212, %arg4[%c0_91, %c0_92] : memref<1x1xf32, #tpu.memory_space<smem>>
    %c0_i32_93 = arith.constant 0 : i32
    %214 = arith.cmpi eq, %arg0, %c0_i32_93 : i32
    %215 = arith.extui %214 : i1 to i32
    %c0_i32_94 = arith.constant 0 : i32
    %216 = arith.cmpi ne, %215, %c0_i32_94 : i32
    scf.if %216 {
      %c0_95 = arith.constant 0 : index
      %c0_96 = arith.constant 0 : index
      %217 = memref.load %arg4[%c0_95, %c0_96] : memref<1x1xf32, #tpu.memory_space<smem>>
      %cst_97 = arith.constant 0.000000e+00 : f32
      %218 = arith.subf %cst_97, %217 : f32
      %cst_98 = arith.constant 1.562500e-02 : f32
      %219 = arith.mulf %218, %cst_98 : f32
      %220 = math.exp %219 : f32
      %c0_99 = arith.constant 0 : index
      %c0_100 = arith.constant 0 : index
      %221 = memref.load %arg3[%c0_99, %c0_100] : memref<1x1xf32, #tpu.memory_space<smem>>
      memref.store %220, %arg3[%c0_99, %c0_100] : memref<1x1xf32, #tpu.memory_space<smem>>
    } else {
    }
    return
  }
  func.func @transform_0(%arg0: i32) -> (i32, i32) {
    %c0_i32 = arith.constant 0 : i32
    %c0_i32_0 = arith.constant 0 : i32
    %c0_i32_1 = arith.constant 0 : i32
    return %c0_i32, %c0_i32_0 : i32, i32
  }
  func.func @transform_1(%arg0: i32) -> (i32, i32) {
    %c0_i32 = arith.constant 0 : i32
    %c0_i32_0 = arith.constant 0 : i32
    return %c0_i32, %arg0 : i32, i32
  }
  func.func @transform_2(%arg0: i32) -> (i32, i32) {
    %c0_i32 = arith.constant 0 : i32
    %c0_i32_0 = arith.constant 0 : i32
    %c0_i32_1 = arith.constant 0 : i32
    return %c0_i32, %c0_i32_0 : i32, i32
  }
}

</mosaic_0001>

<bundles_post_ra>
// kernel: diversity_loss.1
= control target key start
LH: loop header
LB: loop body
LE: loop exit
PB: predicated region body
PF: predicated region fallthrough
CT: control target
= control target key end

     0   :  { %vm23_vm0 = vcmask 523264   ;;  %vm33_vm1 = vcmask 130048   ;;  %s446_s0 = inlined_call_operand.vmem [shape: f32[8,16], index: 0, kind: input, shape index: {}]   ;;  %s447_s1 = inlined_call_operand.vmem [shape: f32[8,64], index: 1, kind: input, shape index: {}]   ;;  %s448_s2 = inlined_call_operand.hbm [shape: f32[1,1], index: 2, kind: output, shape index: {}]  }
   0x1   :  { %v348_v0 = vld [vmem:[%s447_s1] sm:$0xff] }
   0x2   :  { %v297_v1 = vld [vmem:[%s447_s1 + $0x2] ss:$0 sm:$0xff]  ;;  %v298_v2 = vld [vmem:[%s447_s1 + $0x1] ss:$0 sm:$0xff]  ;;  %v299_v4 = vld [vmem:[%s447_s1] ss:$0 sm:$0xff] }
   0x3   :  { %v81_v3 = vsub.f32 %v348_v0, %v297_v1  ;;  %v363_v5 = vld [vmem:[%s446_s0] sm:$0xff]  ;;  %v53_v6 = vsub.f32 %v348_v0, %v298_v2  ;;  %v21_v10 = vsub.f32 %v348_v0, %v299_v4 }
   0x4   :  { %v300_v7 = vld [vmem:[%s446_s0 + $0x2] ss:$0 sm:$0xff]  ;;  %v301_v8 = vld [vmem:[%s446_s0 + $0x1] ss:$0 sm:$0xff]  ;;  %v302_v11 = vld [vmem:[%s446_s0] ss:$0 sm:$0xff] }
   0x5   :  { %v82_v9 = vand.u32 2147483647, %v81_v3  ;;  %v54_v12 = vand.u32 2147483647, %v53_v6  ;;  %v89_v13 = vsub.f32 %v363_v5, %v300_v7  ;;  %v61_v14 = vsub.f32 %v363_v5, %v301_v8  ;;  %v303_v21 = vld [vmem:[%s447_s1 + $0x4] ss:$0 sm:$0xff] }
   0x6   :  { %v22_v16 = vand.u32 2147483647, %v21_v10  ;;  %v31_v17 = vsub.f32 %v363_v5, %v302_v11  ;;  %v304_v23 = vld [vmem:[%s446_s0 + $0x3] ss:$0 sm:$0xff]  ;;  %v137_v27 = vsub.f32 %v348_v0, %v303_v21  ;;  %v306_v33 = vld [vmem:[%s446_s0 + $0x5] ss:$0 sm:$0xff] }
   0x7   :  { %v83_v15 = vsel %vm23_vm0, %v82_v9, 0.0  ;;  %v55_v18 = vsel %vm23_vm0, %v54_v12, 0.0  ;;  %v90_v20 = vmul.f32 %v89_v13, %v89_v13  ;;  %v62_v22 = vmul.f32 %v61_v14, %v61_v14  ;;  %v305_v25 = vld [vmem:[%s447_s1 + $0x3] ss:$0 sm:$0xff] }
   0x8   :  { %84 = vadd.xlane.f32.xlu2 %v83_v15  ;;  %56 = vadd.xlane.f32.xlu1 %v55_v18  ;;  %v24_v19 = vsel %vm23_vm0, %v22_v16, 0.0  ;;  %v32_v24 = vmul.f32 %v31_v17, %v31_v17  ;;  %v117_v29 = vsub.f32 %v363_v5, %v304_v23  ;;  %v109_v31 = vsub.f32 %v348_v0, %v305_v25 }
   0x9   :  { %25 = vadd.xlane.f32.xlu0 %v24_v19  ;;  %v91_v26 = vsel %vm33_vm1, %v90_v20, 0.0  ;;  %v63_v28 = vsel %vm33_vm1, %v62_v22, 0.0  ;;  %v138_v32 = vand.u32 2147483647, %v137_v27 }
   0xa   :  { %v34_v30 = vsel %vm33_vm1, %v32_v24, 0.0 }
  0x10   :  { %92 = vadd.xlane.f32.xlu2 %v91_v26  ;;  %64 = vadd.xlane.f32.xlu1 %v63_v28 }
  0x11   :  { %7 = vsyncpa [#allocation4], 0  ;;  %35 = vadd.xlane.f32.xlu0 %v34_v30  ;;  %v118_v34 = vmul.f32 %v117_v29, %v117_v29  ;;  %v307_v35 = vld [vmem:[%s447_s1 + $0x5] ss:$0 sm:$0xff]  ;;  %v110_v36 = vand.u32 2147483647, %v109_v31  ;;  %v173_v39 = vsub.f32 %v363_v5, %v306_v33 }
  0x12   :  { %v308_v37 = vld [vmem:[%s446_s0 + $0x4] ss:$0 sm:$0xff]  ;;  %v139_v38 = vsel %vm23_vm0, %v138_v32, 0.0  ;;  %v165_v41 = vsub.f32 %v348_v0, %v307_v35  ;;  %v311_v45 = vld [vmem:[%s447_s1 + $0x7] ss:$0 sm:$0xff]  ;;  %vm39_vm2 = vcmask 7168  }
  0x13   :  { %v119_v40 = vsel %vm33_vm1, %v118_v34, 0.0  ;;  %v111_v42 = vsel %vm23_vm0, %v110_v36, 0.0  ;;  %v145_v43 = vsub.f32 %v363_v5, %v308_v37  ;;  %v174_v44 = vmul.f32 %v173_v39, %v173_v39  ;;  %v309_v47 = vld [vmem:[%s446_s0 + $0x6] ss:$0 sm:$0xff]  ;;  %v312_v59 = vld [vmem:[%s446_s0 + $0x7] ss:$0 sm:$0xff] }
  0x14   :  { %v166_v46 = vand.u32 2147483647, %v165_v41  ;;  %v310_v49 = vld [vmem:[%s447_s1 + $0x6] ss:$0 sm:$0xff]  ;;  %v221_v51 = vsub.f32 %v348_v0, %v311_v45  ;;  %v201_v53 = vsub.f32 %v363_v5, %v309_v47  ;;  %v229_v63 = vsub.f32 %v363_v5, %v312_v59  ;;  %s268_s6 = sshll.u32 %s448_s2, 4  ;;  %s329_s8 = smov [#allocation3]   ;;  %s269_s6 = int_to_ptr.hbm [resolvable:$true] %s268_s6 }
  0x15   :  { %v146_v48 = vmul.f32 %v145_v43, %v145_v43  ;;  %v175_v50 = vsel %vm33_vm1, %v174_v44, 0.0  ;;  %v193_v55 = vsub.f32 %v348_v0, %v310_v49 }
  0x16   :  { %v167_v52 = vsel %vm23_vm0, %v166_v46, 0.0  ;;  %v222_v56 = vand.u32 2147483647, %v221_v51  ;;  %v202_v57 = vmul.f32 %v201_v53, %v201_v53  ;;  %v230_v0 = vmul.f32 %v229_v63, %v229_v63 }
  0x17   :  { %v147_v54 = vsel %vm33_vm1, %v146_v48, 0.0  ;;  %v194_v58 = vand.u32 2147483647, %v193_v55 }
  0x18   :  { %140 = vadd.xlane.f32.xlu2 %v139_v38  ;;  %120 = vadd.xlane.f32.xlu1 %v119_v40  ;;  %v223_v60 = vsel %vm23_vm0, %v222_v56, 0.0  ;;  %v203_v61 = vsel %vm33_vm1, %v202_v57, 0.0  ;;  %v231_v1 = vsel %vm33_vm1, %v230_v0, 0.0 }
  0x19   :  { %112 = vadd.xlane.f32.xlu0 %v111_v42  ;;  %v195_v62 = vsel %vm23_vm0, %v194_v58, 0.0 }
  0x20   :  { %176 = vadd.xlane.f32.xlu2 %v175_v50  ;;  %168 = vadd.xlane.f32.xlu1 %v167_v52 }
  0x21   :  { %148 = vadd.xlane.f32.xlu0 %v147_v54 }
  0x28   :  { %224 = vadd.xlane.f32.xlu2 %v223_v60  ;;  %204 = vadd.xlane.f32.xlu1 %v203_v61 }
  0x29   :  { %196 = vadd.xlane.f32.xlu0 %v195_v62 }
  0x31   :  { %232 = vadd.xlane.f32.xlu0 %v231_v1 }
  0x7b   :  { %v85_v2 = vpop.xlane.xlu2 %84  ;;  %v57_v3 = vpop.xlane.xlu1 %56 }
  0x7c   :  { %v26_v4 = vpop.xlane.xlu0 %25  ;;  %v86_v6 = vmul.f32 0.015625, %v85_v2  ;;  %v58_v10 = vmul.f32 0.015625, %v57_v3 }
  0x7d   :  { %v27_v13 = vmul.f32 0.015625, %v26_v4 }
  0x83   :  { %v93_v7 = vpop.xlane.xlu2 %92  ;;  %v65_v9 = vpop.xlane.xlu1 %64 }
  0x84   :  { %v94_v8 = vmul.f32 0.0625, %v93_v7  ;;  %v66_v11 = vmul.f32 0.0625, %v65_v9  ;;  %v36_v12 = vpop.xlane.xlu0 %35 }
  0x85   :  { %v37_v5 = vmul.f32 0.0625, %v36_v12 }
  0x86   :  { %v95_v14 = vmul.f32 %v94_v8, %v86_v6  ;;  %v67_v15 = vmul.f32 %v66_v11, %v58_v10 }
  0x87   :  { %v38_v17 = vmul.f32 %v37_v5, %v27_v13 }
  0x88   :  { %v96_v16 = vsel %vm39_vm2, %v95_v14, 0.0  ;;  %v68_v18 = vsel %vm39_vm2, %v67_v15, 0.0 }
  0x89   :  { %97 = vadd.xlane.f32.xlu0 %v96_v16  ;;  %69 = vadd.xlane.f32.xlu2 %v68_v18  ;;  %v40_v19 = vsel %vm39_vm2, %v38_v17, 0.0 }
  0x8a   :  { %41 = vadd.xlane.f32.xlu1 %v40_v19 }
  0x8b   :  { %v141_v20 = vpop.xlane.xlu2 %140  ;;  %v121_v21 = vpop.xlane.xlu1 %120 }
  0x8c   :  { %v122_v22 = vmul.f32 0.0625, %v121_v21  ;;  %v113_v23 = vpop.xlane.xlu0 %112  ;;  %v142_v28 = vmul.f32 0.015625, %v141_v20 }
  0x8d   :  { %v114_v24 = vmul.f32 0.015625, %v113_v23 }
  0x8f   :  { %v123_v25 = vmul.f32 %v122_v22, %v114_v24 }
  0x91   :  { %v124_v26 = vsel %vm39_vm2, %v123_v25, 0.0 }
  0x92   :  { %125 = vadd.xlane.f32.xlu1 %v124_v26 }
  0x93   :  { %v177_v27 = vpop.xlane.xlu2 %176  ;;  %v169_v30 = vpop.xlane.xlu1 %168 }
  0x94   :  { %v178_v29 = vmul.f32 0.0625, %v177_v27  ;;  %v170_v31 = vmul.f32 0.015625, %v169_v30  ;;  %v149_v32 = vpop.xlane.xlu0 %148 }
  0x95   :  { %v150_v33 = vmul.f32 0.0625, %v149_v32 }
  0x96   :  { %v179_v34 = vmul.f32 %v178_v29, %v170_v31 }
  0x97   :  { %v151_v35 = vmul.f32 %v150_v33, %v142_v28 }
  0x98   :  { %v180_v36 = vsel %vm39_vm2, %v179_v34, 0.0 }
  0x99   :  { %181 = vadd.xlane.f32.xlu0 %v180_v36  ;;  %v152_v37 = vsel %vm39_vm2, %v151_v35, 0.0 }
  0x9a   :  { %153 = vadd.xlane.f32.xlu2 %v152_v37 }
  0x9b   :  { %v205_v38 = vpop.xlane.xlu1 %204  ;;  %v225_v43 = vpop.xlane.xlu2 %224 }
  0x9c   :  { %v206_v39 = vmul.f32 0.0625, %v205_v38  ;;  %v197_v40 = vpop.xlane.xlu0 %196  ;;  %v226_v45 = vmul.f32 0.015625, %v225_v43 }
  0x9d   :  { %v198_v41 = vmul.f32 0.015625, %v197_v40 }
  0x9f   :  { %v207_v42 = vmul.f32 %v206_v39, %v198_v41 }
  0xa1   :  { %v208_v44 = vsel %vm39_vm2, %v207_v42, 0.0 }
  0xa2   :  { %209 = vadd.xlane.f32.xlu1 %v208_v44 }
  0xa4   :  { %v233_v46 = vpop.xlane.xlu0 %232 }
  0xa5   :  { %v234_v47 = vmul.f32 0.0625, %v233_v46 }
  0xa7   :  { %v235_v48 = vmul.f32 %v234_v47, %v226_v45 }
  0xa9   :  { %v236_v49 = vsel %vm39_vm2, %v235_v48, 0.0 }
  0xaa   :  { %237 = vadd.xlane.f32.xlu2 %v236_v49 }
  0xfc   :  { %v98_v50 = vpop.xlane.xlu0 %97  ;;  %v70_v51 = vpop.xlane.xlu2 %69 }
  0xfd   :  { %v99_v52 = vrot.slane %v98_v50, 4  ;;  %v71_v53 = vrot.slane %v70_v51, 4  ;;  %v42_v54 = vpop.xlane.xlu1 %41 }
  0xfe   :  { %v43_v55 = vrot.slane %v42_v54, 4 }
  0xff   :  { %v100_v56 = vadd.f32 %v99_v52, %v98_v50  ;;  %v72_v57 = vadd.f32 %v71_v53, %v70_v51 }
 0x100   :  { %v44_v58 = vadd.f32 %v43_v55, %v42_v54 }
 0x101   :  { %v101_v59 = vrot.slane %v100_v56, 2  ;;  %v73_v60 = vrot.slane %v72_v57, 2 }
 0x102   :  { %v45_v61 = vrot.slane %v44_v58, 2 }
 0x103   :  { %v102_v62 = vadd.f32 %v101_v59, %v100_v56  ;;  %v74_v63 = vadd.f32 %v73_v60, %v72_v57 }
 0x104   :  { %v46_v0 = vadd.f32 %v45_v61, %v44_v58 }
 0x105   :  { %v103_v1 = vrot.slane %v102_v62, 1  ;;  %v126_v2 = vpop.xlane.xlu1 %125  ;;  %v75_v3 = vrot.slane %v74_v63, 1 }
 0x106   :  { %v127_v4 = vrot.slane %v126_v2, 4  ;;  %v47_v6 = vrot.slane %v46_v0, 1 }
 0x107   :  { %v76_v7 = vadd.f32 %v75_v3, %v74_v63  ;;  %v104_v10 = vadd.f32 %v103_v1, %v102_v62 }
 0x108   :  { %v128_v8 = vadd.f32 %v127_v4, %v126_v2  ;;  %v48_v9 = vadd.f32 %v47_v6, %v46_v0 }
 0x10a   :  { %v129_v11 = vrot.slane %v128_v8, 2  ;;  %278 = vpush %v48_v9 }
 0x10b   :  { %280 = vpush %v76_v7 }
 0x10c   :  { %282 = vpush %v104_v10  ;;  %v182_v12 = vpop.xlane.xlu0 %181  ;;  %v130_v13 = vadd.f32 %v129_v11, %v128_v8 }
 0x10d   :  { %v154_v5 = vpop.xlane.xlu2 %153  ;;  %v183_v14 = vrot.slane %v182_v12, 4 }
 0x10e   :  { %v155_v15 = vrot.slane %v154_v5, 4  ;;  %v131_v16 = vrot.slane %v130_v13, 1 }
 0x10f   :  { %v184_v17 = vadd.f32 %v183_v14, %v182_v12 }
 0x110   :  { %v156_v18 = vadd.f32 %v155_v15, %v154_v5  ;;  %v132_v19 = vadd.f32 %v131_v16, %v130_v13 }
 0x111   :  { %v185_v20 = vrot.slane %v184_v17, 2 }
 0x112   :  { %v157_v21 = vrot.slane %v156_v18, 2  ;;  %284 = vpush %v132_v19 }
 0x113   :  { %v186_v22 = vadd.f32 %v185_v20, %v184_v17 }
 0x114   :  { %v158_v23 = vadd.f32 %v157_v21, %v156_v18 }
 0x115   :  { %v210_v24 = vpop.xlane.xlu1 %209  ;;  %v187_v25 = vrot.slane %v186_v22, 1 }
 0x116   :  { %v211_v26 = vrot.slane %v210_v24, 4  ;;  %v159_v27 = vrot.slane %v158_v23, 1 }
 0x117   :  { %v188_v28 = vadd.f32 %v187_v25, %v186_v22 }
 0x118   :  { %v212_v29 = vadd.f32 %v211_v26, %v210_v24  ;;  %v160_v30 = vadd.f32 %v159_v27, %v158_v23 }
 0x11a   :  { %v213_v31 = vrot.slane %v212_v29, 2  ;;  %286 = vpush %v160_v30 }
 0x11b   :  { %288 = vpush %v188_v28 }
 0x11c   :  { %v214_v32 = vadd.f32 %v213_v31, %v212_v29 }
 0x11d   :  { %v238_v33 = vpop.xlane.xlu2 %237 }
 0x11e   :  { %v239_v34 = vrot.slane %v238_v33, 4  ;;  %v215_v35 = vrot.slane %v214_v32, 1 }
 0x120   :  { %v240_v36 = vadd.f32 %v239_v34, %v238_v33  ;;  %v216_v37 = vadd.f32 %v215_v35, %v214_v32 }
 0x122   :  { %v241_v38 = vrot.slane %v240_v36, 2  ;;  %290 = vpush %v216_v37 }
 0x124   :  { %v242_v39 = vadd.f32 %v241_v38, %v240_v36 }
 0x126   :  { %v243_v40 = vrot.slane %v242_v39, 1 }
 0x128   :  { %v244_v41 = vadd.f32 %v243_v40, %v242_v39 }
 0x12a   :  { %292 = vpush %v244_v41 }
 0x13b   :  { %s279_s0 = spop %278 }
 0x13c   :  { %s281_s16 = spop %280 }
 0x13d   :  { %s78_s17 = sadd.f32 %s281_s16, %s279_s0  ;;  %s283_s18 = spop %282 }
 0x13f   :  { %s106_s20 = sadd.f32 %s283_s18, %s78_s17 }
 0x143   :  { %s285_s19 = spop %284 }
 0x144   :  { %s134_s22 = sadd.f32 %s285_s19, %s106_s20 }
 0x14b   :  { %s287_s21 = spop %286 }
 0x14c   :  { %s162_s23 = sadd.f32 %s287_s21, %s134_s22  ;;  %s289_s24 = spop %288 }
 0x14e   :  { %s190_s26 = sadd.f32 %s289_s24, %s162_s23 }
 0x153   :  { %s291_s25 = spop %290 }
 0x154   :  { %s218_s27 = sadd.f32 %s291_s25, %s190_s26 }
 0x15b   :  { %s293_s28 = spop %292 }
 0x15c   :  { %s246_s29 = sadd.f32 %s293_s28, %s218_s27 }
 0x15e   :  { %s255_s30 = ssub.f32 0.0, %s246_s29 }
 0x160   :  { %s256_s3 = smul.f32 0.015625, %s255_s30 }
 0x162   :  { %v257_v42 = vstv %s256_s3 }
 0x163   :  { %v258_v43 = vmul.f32 1.442695, %v257_v42 }
 0x165   :  { %313 = vpow2.f32 %v258_v43 }
 0x16b   :  { %v314_v44 = vpop.eup %313 }
 0x16c   :  { %294 = vpush %v314_v44 }
 0x19d   :  { %s295_s7 = spop %294 }
 0x19e   :  { %262 = sst [smem:[#allocation3]] %s295_s7 }
 0x19f   :  { %271 = dma.smem_to_hbm %s329_s8, 16, %s269_s6, [#allocation4]  }
 0x1a0   :  { %327 = dma.done.wait [#allocation4], 16  }
 0x1a1   :  { %328 = vsyncadd [#allocation4], 4294967280 }
 0x1a2   :  { %276 = sfence }
 0x1a3   :  { %277 = vsyncpa [#allocation4], 1 }

</bundles_post_ra>
